<compile_context>
chip_gen: v6e
topology: v6e:2x2x1
jax: 0.10.0
libtpu: 0.0.40
codegen_flags: <defaults>
</compile_context>

<pallas_src>
import functools

import jax
import jax.numpy as jnp
from jax import lax
from jax.experimental import pallas as pl
from jax.experimental.pallas import tpu as pltpu


# ---------------------------------------------------------------------------
# Fused Conv1d (K taps, stride S, zero-pad P) + bias + LeakyReLU Pallas kernel.
# ---------------------------------------------------------------------------
def _conv_lrelu_kernel(x_lo_ref, *rest, stride, k_taps, t_l, alpha, halo):
    # x_lo_ref: (1, stride, C_in, t_l | M) phase-decomposed padded input (bf16)
    # x_hi_ref: (1, stride, C_in, 128) halo block (only when `halo`)
    # w_ref   : (C_out, K*C_in) bf16 weights, row index = k*C_in + ci
    # b_ref   : (C_out, 1) f32 bias
    # o_ref   : (1, C_out, T_L) output tile
    if halo:
        x_hi_ref, w_ref, b_ref, o_ref = rest
    else:
        w_ref, b_ref, o_ref = rest

    # Per phase r, materialize the row block once; every tap slice below is a
    # static unit-stride lane slice of it.
    exts = []
    for r in range(stride):
        row = x_lo_ref[0, r]                                   # (C_in, t_l | M)
        if halo:
            row = jnp.concatenate([row, x_hi_ref[0, r]], axis=-1)
        exts.append(row)

    # im2col patch: tap k -> phase r = k % stride, lane offset q = k // stride.
    cols = [exts[k % stride][:, (k // stride):(k // stride) + t_l]
            for k in range(k_taps)]
    patch = jnp.concatenate(cols, axis=0)                      # (K*C_in, T_L)

    # Single MXU matmul with f32 accumulation, then fused bias + LeakyReLU.
    acc = jnp.dot(w_ref[...], patch, preferred_element_type=jnp.float32)
    acc = acc + b_ref[...]
    acc = jnp.maximum(acc, alpha * acc)                        # LeakyReLU
    o_ref[0] = acc.astype(o_ref.dtype)


def conv1d_lrelu_pallas(x, w, b, *, stride, padding, alpha, block_l=512):
    """leaky_relu(conv1d(x, w, b, stride=stride, zero-pad=padding), alpha).

    x: (N, C_in, L)   w: (C_out, C_in, K)   b: (C_out,)  ->  (N, C_out, L_out) bf16
    """
    n, c_in, l = x.shape
    c_out, c_in_w, k = w.shape
    assert c_in == c_in_w
    l_out = (l + 2 * padding - k) // stride + 1
    q_taps = -(-k // stride)                        # ceil(K / stride)

    # Lane-dense tiling of L_out (multiples of 128 for the long layers).
    halo = (l_out % block_l == 0) and (l_out > block_l)
    t_l = block_l if halo else l_out
    n_tiles = l_out // t_l
    m_pad = n_tiles * t_l + 128 if halo else l_out + q_taps - 1
    right = m_pad * stride - padding - l
    assert right >= 0

    # Phase decomposition: x_phased[n, r, c, m] == x_zero_padded[n, c, m*stride + r].
    xp = jnp.pad(x, ((0, 0), (0, 0), (padding, right)))
    xp = xp.reshape(n, c_in, m_pad, stride)
    xp = jnp.transpose(xp, (0, 3, 1, 2)).astype(jnp.bfloat16)  # (N, S, C_in, M)

    # Weight -> (C_out, K*C_in), row index k*C_in + ci (matches the patch build).
    w2 = jnp.transpose(w, (0, 2, 1)).reshape(c_out, k * c_in).astype(jnp.bfloat16)
    b2 = b.reshape(c_out, 1).astype(jnp.float32)

    if halo:
        hi_per_tile = t_l // 128
        in_specs = [
            pl.BlockSpec((1, stride, c_in, t_l), lambda i, j: (i, 0, 0, j)),
            pl.BlockSpec((1, stride, c_in, 128),
                         lambda i, j: (i, 0, 0, (j + 1) * hi_per_tile)),
        ]
        x_args = (xp, xp)
    else:
        in_specs = [
            pl.BlockSpec((1, stride, c_in, m_pad), lambda i, j: (i, 0, 0, 0)),
        ]
        x_args = (xp,)
    in_specs += [
        pl.BlockSpec((c_out, k * c_in), lambda i, j: (0, 0)),
        pl.BlockSpec((c_out, 1), lambda i, j: (0, 0)),
    ]

    kern = functools.partial(_conv_lrelu_kernel, stride=stride, k_taps=k,
                             t_l=t_l, alpha=alpha, halo=halo)
    return pl.pallas_call(
        kern,
        out_shape=jax.ShapeDtypeStruct((n, c_out, l_out), jnp.bfloat16),
        grid=(n, n_tiles),
        in_specs=in_specs,
        out_specs=pl.BlockSpec((1, c_out, t_l), lambda i, j: (i, 0, j)),
        compiler_params=pltpu.CompilerParams(
            dimension_semantics=("parallel", "parallel")),
    )(*x_args, w2, b2)


# ---------------------------------------------------------------------------
# fc1 (256*model_size -> 1) as a tiny Pallas reduction kernel.
# ---------------------------------------------------------------------------
def _linear_kernel(x_ref, w_ref, b_ref, o_ref):
    x = x_ref[...].astype(jnp.float32)                         # (N, F)
    w = w_ref[...]                                             # (1, F) f32
    o_ref[...] = jnp.sum(x * w, axis=1, keepdims=True) + b_ref[...]


def linear_pallas(x, w, b):
    """y = x @ w.T + b  with  x:(N,F), w:(1,F), b:(1,)  ->  (N,1) f32."""
    n, f = x.shape
    return pl.pallas_call(
        _linear_kernel,
        out_shape=jax.ShapeDtypeStruct((n, 1), jnp.float32),
        grid=(1,),
        in_specs=[pl.BlockSpec((n, f), lambda i: (0, 0)),
                  pl.BlockSpec((1, f), lambda i: (0, 0)),
                  pl.BlockSpec((1, 1), lambda i: (0, 0))],
        out_specs=pl.BlockSpec((n, 1), lambda i: (0, 0)),
        compiler_params=pltpu.CompilerParams(dimension_semantics=("arbitrary",)),
    )(x, w.astype(jnp.float32), b.reshape(1, 1).astype(jnp.float32))


# ---------------------------------------------------------------------------
# PhaseShuffle: per-batch random shift in [-n, n] with reflect padding.
# ---------------------------------------------------------------------------
def phase_shuffle(x, shift):
    # TODO(synk): data-dependent per-batch reflect shift; done as a JAX gather
    # (memory-bound and tiny vs the convs), not as a Pallas kernel.
    n, c, l = x.shape
    pos = jnp.arange(l, dtype=jnp.int32)[None, :] - shift[:, None]   # (N, L)
    pos = jnp.where(pos < 0, -pos, pos)
    pos = jnp.where(pos > l - 1, 2 * (l - 1) - pos, pos)
    idx = jnp.broadcast_to(pos[:, None, :], (n, c, l))
    return jnp.take_along_axis(x, idx, axis=2)


# ---------------------------------------------------------------------------
# Discriminator (JAX/Pallas port of the PyTorch module's forward pass).
# ---------------------------------------------------------------------------
class Discriminator:

    def __init__(self, model_size=64, num_channels=1, shift_factor=2,
                 alpha=0.2, key=None):
        self.alpha = float(alpha)
        self.model_size = model_size
        self.shift_factor = int(shift_factor)
        if key is None:
            key = jax.random.PRNGKey(0)
        chans = [num_channels, model_size, 2 * model_size, 4 * model_size,
                 8 * model_size, 16 * model_size]
        ksz = 25
        keys = jax.random.split(key, 11)
        self.conv_ws, self.conv_bs = [], []
        for i in range(5):
            fan_in = chans[i] * ksz
            w = jax.random.normal(keys[2 * i], (chans[i + 1], chans[i], ksz),
                                  jnp.float32) * (2.0 / fan_in) ** 0.5
            bb = jax.random.uniform(keys[2 * i + 1], (chans[i + 1],),
                                    jnp.float32, -1.0, 1.0) / fan_in ** 0.5
            self.conv_ws.append(w)
            self.conv_bs.append(bb)
        f = 256 * model_size
        self.fc_w = jax.random.normal(keys[10], (1, f), jnp.float32) * (2.0 / f) ** 0.5
        self.fc_b = jnp.zeros((1,), jnp.float32)

    def __call__(self, x, key):
        n = x.shape[0]
        ps_keys = jax.random.split(key, 4)
        for i in range(5):
            x = conv1d_lrelu_pallas(x, self.conv_ws[i], self.conv_bs[i],
                                    stride=4, padding=11, alpha=self.alpha)
            if i < 4 and self.shift_factor > 0:
                shift = jax.random.randint(ps_keys[i], (n,),
                                           -self.shift_factor,
                                           self.shift_factor + 1)
                x = phase_shuffle(x, shift)
        x = x.reshape(n, -1)                       # (N, 256*model_size)
        return linear_pallas(x, self.fc_w, self.fc_b)


# ---------------------------------------------------------------------------
# Reference conv+LeakyReLU (mirrors the kernel's bf16 input rounding).
# ---------------------------------------------------------------------------
def _conv_lrelu_ref(x, w, b, stride, padding, alpha):
    xf = x.astype(jnp.bfloat16).astype(jnp.float32)
    wf = w.astype(jnp.bfloat16).astype(jnp.float32)
    y = lax.conv_general_dilated(xf, wf, (stride,), [(padding, padding)],
                                 dimension_numbers=("NCH", "OIH", "NCH"))
    y = y + b[None, :, None]
    y = jnp.maximum(y, alpha * y)
    return y.astype(jnp.bfloat16)


if __name__ == "__main__":
    key = jax.random.PRNGKey(0)
    kx, kparam, kps = jax.random.split(key, 3)

    # Small test config: model_size=8; the input length 16*4^5 = 16384 is fixed
    # by the architecture (5 stride-4 convs must end at length 16 for the
    # view(-1, 256*model_size) to be valid).
    model_size = 8
    batch = 2
    length = 16 * 4 ** 5
    x = jax.random.normal(kx, (batch, 1, length), jnp.float32)

    disc = Discriminator(model_size=model_size, num_channels=1,
                         shift_factor=2, alpha=0.2, key=kparam)

    # Full forward (Pallas conv+LeakyReLU kernels, JAX phase-shuffle gather,
    # Pallas fc kernel).
    y = disc(x, key=kps)
    jax.block_until_ready(y)
    assert y.shape == (batch, 1), y.shape
    assert bool(jnp.all(jnp.isfinite(y)))

    # Per-layer validation of the Pallas conv kernel against lax.conv.
    a = x.astype(jnp.bfloat16)
    for w, b in zip(disc.conv_ws, disc.conv_bs):
        y_pal = conv1d_lrelu_pallas(a, w, b, stride=4, padding=11,
                                    alpha=disc.alpha)
        y_ref = _conv_lrelu_ref(a, w, b, 4, 11, disc.alpha)
        scale = float(jnp.max(jnp.abs(y_ref.astype(jnp.float32)))) + 1e-6
        err = float(jnp.max(jnp.abs(y_pal.astype(jnp.float32) -
                                    y_ref.astype(jnp.float32))))
        assert err <= 2e-2 * scale, (err, scale)
        a = y_pal

    # Validate the fc kernel.
    feat = a.reshape(batch, -1)
    fc_ref = (jnp.sum(feat.astype(jnp.float32) * disc.fc_w.astype(jnp.float32),
                      axis=1, keepdims=True) + disc.fc_b)
    fc_pal = linear_pallas(feat, disc.fc_w, disc.fc_b)
    assert bool(jnp.allclose(fc_pal, fc_ref, rtol=1e-3, atol=1e-3))

    print("KERNEL_OK")
</pallas_src>

<mosaic_0001>
module attributes {stable_mosaic.version = 11 : i64} {
  func.func @_conv_lrelu_kernel(%arg0: i32, %arg1: i32, %arg2: memref<1x4x1x512xbf16, #tpu.memory_space<vmem>>, %arg3: memref<1x4x1x128xbf16, #tpu.memory_space<vmem>>, %arg4: memref<8x25xbf16, #tpu.memory_space<vmem>>, %arg5: memref<8x1xf32, #tpu.memory_space<vmem>>, %arg6: memref<1x8x512xbf16, #tpu.memory_space<vmem>>) attributes {dimension_semantics = [#tpu.dimension_semantics<parallel>, #tpu.dimension_semantics<parallel>], iteration_bounds = array<i64: 2, 8>, scalar_prefetch = 0 : i64, scratch_operands = 0 : i64, tpu.core_type = #tpu.core_type<tc>, window_params = [{transform_indices = @transform_0, window_bounds = array<i64: 1, 4, 1, 512>}, {transform_indices = @transform_1, window_bounds = array<i64: 1, 4, 1, 128>}, {pipeline_mode = #tpu.pipeline_mode<synchronous>, transform_indices = @transform_2, window_bounds = array<i64: 8, 25>}, {pipeline_mode = #tpu.pipeline_mode<synchronous>, transform_indices = @transform_3, window_bounds = array<i64: 8, 1>}, {transform_indices = @transform_4, window_bounds = array<i64: 1, 8, 512>}]} {
    %c0 = arith.constant 0 : index
    %c0_0 = arith.constant 0 : index
    %c0_1 = arith.constant 0 : index
    %c0_2 = arith.constant 0 : index
    %0 = vector.load %arg2[%c0, %c0_0, %c0_1, %c0_2] : memref<1x4x1x512xbf16, #tpu.memory_space<vmem>>, vector<1x1x1x512xbf16>
    %1 = vector.shape_cast %0 : vector<1x1x1x512xbf16> to vector<1x512xbf16>
    %c0_3 = arith.constant 0 : index
    %c0_4 = arith.constant 0 : index
    %c0_5 = arith.constant 0 : index
    %c0_6 = arith.constant 0 : index
    %2 = vector.load %arg3[%c0_3, %c0_4, %c0_5, %c0_6] : memref<1x4x1x128xbf16, #tpu.memory_space<vmem>>, vector<1x1x1x128xbf16>
    %3 = vector.shape_cast %2 : vector<1x1x1x128xbf16> to vector<1x128xbf16>
    %4 = tpu.concatenate %1, %3 in 1 : vector<1x512xbf16>, vector<1x128xbf16> -> vector<1x640xbf16>
    %c0_7 = arith.constant 0 : index
    %c1 = arith.constant 1 : index
    %c0_8 = arith.constant 0 : index
    %c0_9 = arith.constant 0 : index
    %5 = vector.load %arg2[%c0_7, %c1, %c0_8, %c0_9] : memref<1x4x1x512xbf16, #tpu.memory_space<vmem>>, vector<1x1x1x512xbf16>
    %6 = vector.shape_cast %5 : vector<1x1x1x512xbf16> to vector<1x512xbf16>
    %c0_10 = arith.constant 0 : index
    %c1_11 = arith.constant 1 : index
    %c0_12 = arith.constant 0 : index
    %c0_13 = arith.constant 0 : index
    %7 = vector.load %arg3[%c0_10, %c1_11, %c0_12, %c0_13] : memref<1x4x1x128xbf16, #tpu.memory_space<vmem>>, vector<1x1x1x128xbf16>
    %8 = vector.shape_cast %7 : vector<1x1x1x128xbf16> to vector<1x128xbf16>
    %9 = tpu.concatenate %6, %8 in 1 : vector<1x512xbf16>, vector<1x128xbf16> -> vector<1x640xbf16>
    %c0_14 = arith.constant 0 : index
    %c2 = arith.constant 2 : index
    %c0_15 = arith.constant 0 : index
    %c0_16 = arith.constant 0 : index
    %10 = vector.load %arg2[%c0_14, %c2, %c0_15, %c0_16] : memref<1x4x1x512xbf16, #tpu.memory_space<vmem>>, vector<1x1x1x512xbf16>
    %11 = vector.shape_cast %10 : vector<1x1x1x512xbf16> to vector<1x512xbf16>
    %c0_17 = arith.constant 0 : index
    %c2_18 = arith.constant 2 : index
    %c0_19 = arith.constant 0 : index
    %c0_20 = arith.constant 0 : index
    %12 = vector.load %arg3[%c0_17, %c2_18, %c0_19, %c0_20] : memref<1x4x1x128xbf16, #tpu.memory_space<vmem>>, vector<1x1x1x128xbf16>
    %13 = vector.shape_cast %12 : vector<1x1x1x128xbf16> to vector<1x128xbf16>
    %14 = tpu.concatenate %11, %13 in 1 : vector<1x512xbf16>, vector<1x128xbf16> -> vector<1x640xbf16>
    %c0_21 = arith.constant 0 : index
    %c3 = arith.constant 3 : index
    %c0_22 = arith.constant 0 : index
    %c0_23 = arith.constant 0 : index
    %15 = vector.load %arg2[%c0_21, %c3, %c0_22, %c0_23] : memref<1x4x1x512xbf16, #tpu.memory_space<vmem>>, vector<1x1x1x512xbf16>
    %16 = vector.shape_cast %15 : vector<1x1x1x512xbf16> to vector<1x512xbf16>
    %c0_24 = arith.constant 0 : index
    %c3_25 = arith.constant 3 : index
    %c0_26 = arith.constant 0 : index
    %c0_27 = arith.constant 0 : index
    %17 = vector.load %arg3[%c0_24, %c3_25, %c0_26, %c0_27] : memref<1x4x1x128xbf16, #tpu.memory_space<vmem>>, vector<1x1x1x128xbf16>
    %18 = vector.shape_cast %17 : vector<1x1x1x128xbf16> to vector<1x128xbf16>
    %19 = tpu.concatenate %16, %18 in 1 : vector<1x512xbf16>, vector<1x128xbf16> -> vector<1x640xbf16>
    %20 = vector.extract_strided_slice %4 {offsets = [0, 0], sizes = [1, 512], strides = [1, 1]} : vector<1x640xbf16> to vector<1x512xbf16>
    %21 = vector.extract_strided_slice %9 {offsets = [0, 0], sizes = [1, 512], strides = [1, 1]} : vector<1x640xbf16> to vector<1x512xbf16>
    %22 = vector.extract_strided_slice %14 {offsets = [0, 0], sizes = [1, 512], strides = [1, 1]} : vector<1x640xbf16> to vector<1x512xbf16>
    %23 = vector.extract_strided_slice %19 {offsets = [0, 0], sizes = [1, 512], strides = [1, 1]} : vector<1x640xbf16> to vector<1x512xbf16>
    %24 = vector.extract_strided_slice %4 {offsets = [0, 1], sizes = [1, 512], strides = [1, 1]} : vector<1x640xbf16> to vector<1x512xbf16>
    %25 = vector.extract_strided_slice %9 {offsets = [0, 1], sizes = [1, 512], strides = [1, 1]} : vector<1x640xbf16> to vector<1x512xbf16>
    %26 = vector.extract_strided_slice %14 {offsets = [0, 1], sizes = [1, 512], strides = [1, 1]} : vector<1x640xbf16> to vector<1x512xbf16>
    %27 = vector.extract_strided_slice %19 {offsets = [0, 1], sizes = [1, 512], strides = [1, 1]} : vector<1x640xbf16> to vector<1x512xbf16>
    %28 = vector.extract_strided_slice %4 {offsets = [0, 2], sizes = [1, 512], strides = [1, 1]} : vector<1x640xbf16> to vector<1x512xbf16>
    %29 = vector.extract_strided_slice %9 {offsets = [0, 2], sizes = [1, 512], strides = [1, 1]} : vector<1x640xbf16> to vector<1x512xbf16>
    %30 = vector.extract_strided_slice %14 {offsets = [0, 2], sizes = [1, 512], strides = [1, 1]} : vector<1x640xbf16> to vector<1x512xbf16>
    %31 = vector.extract_strided_slice %19 {offsets = [0, 2], sizes = [1, 512], strides = [1, 1]} : vector<1x640xbf16> to vector<1x512xbf16>
    %32 = vector.extract_strided_slice %4 {offsets = [0, 3], sizes = [1, 512], strides = [1, 1]} : vector<1x640xbf16> to vector<1x512xbf16>
    %33 = vector.extract_strided_slice %9 {offsets = [0, 3], sizes = [1, 512], strides = [1, 1]} : vector<1x640xbf16> to vector<1x512xbf16>
    %34 = vector.extract_strided_slice %14 {offsets = [0, 3], sizes = [1, 512], strides = [1, 1]} : vector<1x640xbf16> to vector<1x512xbf16>
    %35 = vector.extract_strided_slice %19 {offsets = [0, 3], sizes = [1, 512], strides = [1, 1]} : vector<1x640xbf16> to vector<1x512xbf16>
    %36 = vector.extract_strided_slice %4 {offsets = [0, 4], sizes = [1, 512], strides = [1, 1]} : vector<1x640xbf16> to vector<1x512xbf16>
    %37 = vector.extract_strided_slice %9 {offsets = [0, 4], sizes = [1, 512], strides = [1, 1]} : vector<1x640xbf16> to vector<1x512xbf16>
    %38 = vector.extract_strided_slice %14 {offsets = [0, 4], sizes = [1, 512], strides = [1, 1]} : vector<1x640xbf16> to vector<1x512xbf16>
    %39 = vector.extract_strided_slice %19 {offsets = [0, 4], sizes = [1, 512], strides = [1, 1]} : vector<1x640xbf16> to vector<1x512xbf16>
    %40 = vector.extract_strided_slice %4 {offsets = [0, 5], sizes = [1, 512], strides = [1, 1]} : vector<1x640xbf16> to vector<1x512xbf16>
    %41 = vector.extract_strided_slice %9 {offsets = [0, 5], sizes = [1, 512], strides = [1, 1]} : vector<1x640xbf16> to vector<1x512xbf16>
    %42 = vector.extract_strided_slice %14 {offsets = [0, 5], sizes = [1, 512], strides = [1, 1]} : vector<1x640xbf16> to vector<1x512xbf16>
    %43 = vector.extract_strided_slice %19 {offsets = [0, 5], sizes = [1, 512], strides = [1, 1]} : vector<1x640xbf16> to vector<1x512xbf16>
    %44 = vector.extract_strided_slice %4 {offsets = [0, 6], sizes = [1, 512], strides = [1, 1]} : vector<1x640xbf16> to vector<1x512xbf16>
    %45 = tpu.concatenate %20, %21, %22, %23, %24, %25, %26, %27, %28, %29, %30, %31, %32, %33, %34, %35 in 0 : vector<1x512xbf16>, vector<1x512xbf16>, vector<1x512xbf16>, vector<1x512xbf16>, vector<1x512xbf16>, vector<1x512xbf16>, vector<1x512xbf16>, vector<1x512xbf16>, vector<1x512xbf16>, vector<1x512xbf16>, vector<1x512xbf16>, vector<1x512xbf16>, vector<1x512xbf16>, vector<1x512xbf16>, vector<1x512xbf16>, vector<1x512xbf16> -> vector<16x512xbf16>
    %46 = tpu.concatenate %36, %37, %38, %39, %40, %41, %42, %43, %44 in 0 : vector<1x512xbf16>, vector<1x512xbf16>, vector<1x512xbf16>, vector<1x512xbf16>, vector<1x512xbf16>, vector<1x512xbf16>, vector<1x512xbf16>, vector<1x512xbf16>, vector<1x512xbf16> -> vector<9x512xbf16>
    %47 = tpu.concatenate %45, %46 in 0 : vector<16x512xbf16>, vector<9x512xbf16> -> vector<25x512xbf16>
    %c0_28 = arith.constant 0 : index
    %c0_29 = arith.constant 0 : index
    %48 = vector.load %arg4[%c0_28, %c0_29] : memref<8x25xbf16, #tpu.memory_space<vmem>>, vector<8x25xbf16>
    %cst = arith.constant dense<0.000000e+00> : vector<8x512xf32>
    %49 = tpu.matmul %48, %47, %cst {dimension_numbers = #tpu.dot_dimension_numbers<[1], [0], [0], [1], [0, 0, 1, 1], [], []>} : vector<8x25xbf16>, vector<25x512xbf16>, vector<8x512xf32> -> vector<8x512xf32>
    %c0_30 = arith.constant 0 : index
    %c0_31 = arith.constant 0 : index
    %50 = vector.load %arg5[%c0_30, %c0_31] : memref<8x1xf32, #tpu.memory_space<vmem>>, vector<8x1xf32>
    %51 = vector.broadcast %50 : vector<8x1xf32> to vector<8x512xf32>
    %52 = arith.addf %49, %51 : vector<8x512xf32>
    %cst_32 = arith.constant 2.000000e-01 : f32
    %53 = vector.broadcast %cst_32 : f32 to vector<8x512xf32>
    %54 = arith.mulf %53, %52 : vector<8x512xf32>
    %55 = arith.maximumf %52, %54 : vector<8x512xf32>
    %56 = arith.truncf %55 : vector<8x512xf32> to vector<8x512xbf16>
    %c0_33 = arith.constant 0 : index
    %c0_34 = arith.constant 0 : index
    %c0_35 = arith.constant 0 : index
    %57 = vector.load %arg6[%c0_33, %c0_34, %c0_35] : memref<1x8x512xbf16, #tpu.memory_space<vmem>>, vector<1x8x512xbf16>
    %58 = vector.shape_cast %57 : vector<1x8x512xbf16> to vector<8x512xbf16>
    %59 = vector.shape_cast %56 : vector<8x512xbf16> to vector<1x8x512xbf16>
    tpu.vector_store %arg6[%c0_33, %c0_34, %c0_35], %59 {strides = array<i32>} : memref<1x8x512xbf16, #tpu.memory_space<vmem>>, vector<1x8x512xbf16>,
    return
  }
  func.func @transform_0(%arg0: i32, %arg1: i32) -> (i32, i32, i32, i32) {
    %c0_i32 = arith.constant 0 : i32
    %c0_i32_0 = arith.constant 0 : i32
    %c0_i32_1 = arith.constant 0 : i32
    return %arg0, %c0_i32, %c0_i32_0, %arg1 : i32, i32, i32, i32
  }
  func.func @transform_1(%arg0: i32, %arg1: i32) -> (i32, i32, i32, i32) {
    %c1_i32 = arith.constant 1 : i32
    %0 = arith.addi %arg1, %c1_i32 : i32
    %c4_i32 = arith.constant 4 : i32
    %1 = arith.muli %0, %c4_i32 : i32
    %c0_i32 = arith.constant 0 : i32
    %c0_i32_0 = arith.constant 0 : i32
    %c0_i32_1 = arith.constant 0 : i32
    return %arg0, %c0_i32, %c0_i32_0, %1 : i32, i32, i32, i32
  }
  func.func @transform_2(%arg0: i32, %arg1: i32) -> (i32, i32) {
    %c0_i32 = arith.constant 0 : i32
    %c0_i32_0 = arith.constant 0 : i32
    %c0_i32_1 = arith.constant 0 : i32
    return %c0_i32, %c0_i32_0 : i32, i32
  }
  func.func @transform_3(%arg0: i32, %arg1: i32) -> (i32, i32) {
    %c0_i32 = arith.constant 0 : i32
    %c0_i32_0 = arith.constant 0 : i32
    %c0_i32_1 = arith.constant 0 : i32
    return %c0_i32, %c0_i32_0 : i32, i32
  }
  func.func @transform_4(%arg0: i32, %arg1: i32) -> (i32, i32, i32) {
    %c0_i32 = arith.constant 0 : i32
    %c0_i32_0 = arith.constant 0 : i32
    return %arg0, %c0_i32, %arg1 : i32, i32, i32
  }
}

</mosaic_0001>

<bundles_post_ra>
// kernel: tpu_custom_call.1
= control target key start
LH: loop header
LB: loop body
LE: loop exit
PB: predicated region body
PF: predicated region fallthrough
CT: control target
= control target key end

     0   :  { %9 = vsyncpa [#allocation5], 0  ;;  %s2949_s0 = inlined_call_operand.vmem [shape: bf16[2,4,1,4224], index: 0, kind: input, shape index: {}]   ;;  %s2950_s1 = inlined_call_operand.vmem [shape: bf16[2,4,1,4224], index: 1, kind: input, shape index: {}]   ;;  %s2951_s2 = inlined_call_operand.vmem [shape: bf16[8,25], index: 2, kind: input, shape index: {}]   ;;  %s2952_s3 = inlined_call_operand.vmem [shape: f32[8,1], index: 3, kind: input, shape index: {}]   ;;  %s2953_s4 = inlined_call_operand.hbm [shape: bf16[2,8,4096], index: 4, kind: output, shape index: {}]  }
   0x1   :  { %11 = vsyncpa [#allocation5 + $0x1], 0  ;;  %s2288_s15 = smov 0   ;;  %s2290_s16 = smov 0  }
   0x2   :  { %s2292_s17 = smov 0   ;;  %s2294_s18 = smov 0  }
   0x3   :  { %s2296_s19 = smov 0   ;;  %s2298_s20 = smov 0  }
   0x4   :  { %s2300_s21 = smov 0   ;;  %s2302_s22 = smov 0  }
   0x5   :  { %s2304_s23 = smov 0   ;;  %s2306_s24 = smov 0  }
   0x6 LB: > { %2956 = sst [smem:[#allocation7_spill]] %s2245_s22  ;;  %s1707_s25 = sadd.s32 4294967295, %s2253_s24   ;;  %s2253_s24 = sphi %s2306_s24, %s17_s24   ;;  %s2249_s23 = sphi %s2304_s23, %s2988_s23   ;;  %s2245_s22 = sphi %s2302_s22, %s2987_s22   ;;  %s2241_s21 = sphi %s2300_s21, %s2986_s21   ;;  %s2237_s20 = sphi %s2298_s20, %s2979_s20   ;;  %s2233_s19 = sphi %s2296_s19, %s2985_s19   ;;  %s2229_s18 = sphi %s2294_s18, %s2984_s18   ;;  %s2225_s17 = sphi %s2292_s17, %s2983_s17   ;;  %s2221_s16 = sphi %s2290_s16, %s2982_s16   ;;  %s2217_s15 = sphi %s2288_s15, %s2981_s15  }
   0x7   : > { %s26_s27 = sadd.s32 1, %s2245_s22  ;;  %s29_s28 = sadd.s32 1, %s2249_s23 }
   0x8   : > { %p27_p0 = scmp.ge.s32.totalorder %s26_s27, 8  ;;  %s38_s29 = sadd.s32 1, %s2233_s19 }
   0x9   : > { %p45_p1 = scmp.ne.s32.totalorder %s2233_s19, %s2229_s18  ;;  %p46_p2 = scmp.eq.s32.totalorder %s2253_s24, 0 }
   0xa   : > { %s2990_s27 = smov (%p27_p0, %s26_s27), 0  ;;  %s2992_s28 = smov (!%p27_p0, %s29_s28), %s2249_s23 }
   0xb   : > { %2957 = sst [smem:[#allocation8_spill]] %s2990_s27  ;;  %s34_s30 = ssub.s32 %s2245_s22, %s2990_s27 }
   0xc   : > { %p2356_p3 = por %p46_p2, %p45_p1  ;;  %p31_p4 = scmp.ge.s32.totalorder %s2992_s28, 2 }
   0xd   : > { %s2361_s6 = sshll.u32 %s2245_s22, 2  ;;  %s1772_s8 = sshll.u32 %s2990_s27, 2 }
   0xe   : > { %s1771_s7 = sadd.s32 4, %s2361_s6  ;;  %s2994_s28 = smov (%p31_p4, %s2992_s28), 0 }
   0xf   : > { %s1773_s9 = sadd.s32 4, %s1772_s8  ;;  %s70_s10 = sadd.s32 1, %s2225_s17 }
  0x10   : > { %s33_s11 = ssub.s32 %s2249_s23, %s2994_s28  ;;  %s66_s12 = ssub.s32 %s1771_s7, %s1773_s9 }
  0x11   : > { %s35_s13 = sor.u32 %s34_s30, %s33_s11  ;;  %s67_s14 = sor.u32 %s66_s12, %s33_s11 }
  0x12   : > { %p36_p5 = scmp.eq.s32.totalorder %s35_s13, 0  ;;  %p68_p6 = scmp.eq.s32.totalorder %s67_s14, 0 }
  0x13   : > { %p77_p7 = scmp.ne.s32.totalorder %s2225_s17, %s2221_s16  ;;  %p151_p8 = scmp.eq.s32.totalorder %s1707_s25, 15 }
  0x14   : > { %s2373_s26 = scalar_select %p36_p5, %s2233_s19, %s38_s29  }
  0x15   : > { %s2376_s22 = scalar_select %p68_p6, %s2225_s17, %s70_s10  }
  0x16   : > { %p2380_p9 = por %p77_p7, %p46_p2  ;;  %p2387_p10 = por %p151_p8, %p45_p1 }
  0x17   : > { %p156_p11 = scmp.ne.s32.totalorder %s2229_s18, %s2217_s15  ;;  %s2961_s30 = sadd.s32 4294967294, %s2253_s24  }
  0x18   : > { %p157_p12 = scmp.eq.s32.totalorder %s2961_s30, 15  ;;  %p1712_p0 = scmp.ge.s32.totalorder %s2253_s24, 16 }
  0x1a   : > { %p2395_p13 = por %p157_p12, %p156_p11  ;;  %179 = sbr.rel (%p1712_p0) target bundleno = 49 (0x31), region = 24 }
  0x1f   : > { %182 = sbr.rel (!%p2356_p3) target bundleno = 41 (0x29), region = 28  ;;  %s184_s25 = sand.u32 (%p2356_p3), 1, %s2233_s19  }
  0x20   : > { %s1713_s29 = sshll.u32 (%p2356_p3), %s184_s25, 4  ;;  %s1780_s9 = smul.u32 (%p2356_p3), 132, %s2249_s23 }
  0x21   : > { %s186_s14 = scalar_lea.vmem (%p2356_p3), [#allocation2], %s1713_s29  }
  0x22   : > { %s194_s10 = sadd.s32 (%p2356_p3), %s1780_s9, %s2361_s6 }
  0x23   : > { %s195_s13 = scalar_lea.vmem (%p2356_p3), %s2949_s0, %s194_s10  }
  0x24   : > { %v216_v0 = vld [vmem:[%s195_s13] sm:$0xf] }
  0x25   : > { %v218_v1 = vld [vmem:[%s195_s13 + $0x21] sm:$0xf]  ;;  %217 = vst [vmem:[%s186_s14] sm:$0xf] %v216_v0 }
  0x26   : > { %v220_v2 = vld [vmem:[%s195_s13 + $0x42] sm:$0xf]  ;;  %219 = vst [vmem:[%s186_s14 + $0x4] sm:$0xf] %v218_v1 }
  0x27   : > { %v222_v3 = vld [vmem:[%s195_s13 + $0x63] sm:$0xf]  ;;  %221 = vst [vmem:[%s186_s14 + $0x8] sm:$0xf] %v220_v2 }
  0x28   : > { %223 = vst [vmem:[%s186_s14 + $0xc] sm:$0xf] %v222_v3 }
  0x29 PF: > { %624 = sbr.rel (!%p2380_p9) target bundleno = 49 (0x31), region = 94  ;;  %s626_s5 = sand.u32 (%p2380_p9), 1, %s2225_s17  }
  0x2a   : > { %s1575_s30 = smul.u32 (%p2380_p9), 132, %s2249_s23  ;;  %s1740_s25 = sshll.u32 (%p2380_p9), %s626_s5, 2 }
  0x2b   : > { %s628_s12 = scalar_lea.vmem (%p2380_p9), [#allocation3], %s1740_s25 }
  0x2c   : > { %s1576_s9 = sadd.s32 (%p2380_p9), %s2361_s6, %s1575_s30 }
  0x2d   : > { %s1577_s11 = scalar_lea.vmem (%p2380_p9), %s2950_s1, %s1576_s9 }
  0x2e   : > { %v1742_v4 = vld [vmem:[%s1577_s11 + $0x4] sm:$0x1]  ;;  %v1743_v5 = vld [vmem:[%s1577_s11 + $0x25] sm:$0x1]  ;;  %v1744_v6 = vld [vmem:[%s1577_s11 + $0x46] sm:$0x1] }
  0x2f   : > { %651 = vst [vmem:[%s628_s12] sm:$0x1] %v1742_v4  ;;  %653 = vst [vmem:[%s628_s12 + $0x1] sm:$0x1] %v1743_v5  ;;  %v1745_v7 = vld [vmem:[%s1577_s11 + $0x67] sm:$0x1] }
  0x30   : > { %655 = vst [vmem:[%s628_s12 + $0x2] sm:$0x1] %v1744_v6  ;;  %657 = vst [vmem:[%s628_s12 + $0x3] sm:$0x1] %v1745_v7 }
  0x31 PF: > { %p1746_p1 = scmp.ge.s32.totalorder %s2253_s24, 1  ;;  %p680_p2 = scmp.lt.s32.totalorder %s2253_s24, 17 }
  0x33   : > { %p681_p3 = pnand %p1746_p1, %p680_p2 }
  0x34   : > { %s694_s27 = sand.u32 (!%p681_p3), 1, %s2221_s16   ;;  %s687_s13 = sand.u32 (!%p681_p3), 1, %s2229_s18  }
  0x35   : > { %684 = sbr.rel (%p681_p3) target bundleno = 576 (0x240), region = 128  ;;  %s1748_s6 = sshll.u32 (!%p681_p3), %s694_s27, 2 }
  0x36   : > { %s2422_s14 = sshll.u32 (!%p681_p3), %s687_s13, 4  ;;  %s2424_s5 = scalar_lea.vmem (!%p681_p3), [#allocation3], %s1748_s6 }
  0x37   : > { %s689_s16 = scalar_lea.vmem (!%p681_p3), [#allocation2], %s2422_s14  ;;  %s2256_s30 = smov (!%p681_p3), 127  }
  0x38   : > { %s2257_s25 = smov (!%p681_p3), 126   ;;  %s2258_s9 = smov (!%p681_p3), 125  }
  0x39   : > { %s2259_s29 = smov (!%p681_p3), 124   ;;  %s1765_s6 = sshll.u32 (!%p681_p3), %s2237_s20, 2 }
  0x3a   : > { %v746_v8 = vlaneseq  ;;  %vm1153_vm0 = vcmask 1040384   ;;  %v2255_v9 = vmov 1966171168   ;;  %vm1154_vm1 = vsmask.f32 256  ;;  %s722_s20 = scalar_lea.vmem [#allocation4], %s2422_s14 }
  0x3b   : > { %v744_v10 = vunpack.c.l.s4 %v2255_v9  ;;  %v2427_v12 = vld [vmem:[%s2424_s5] sm:$0x1]  ;;  %v1752_v13 = vld [vmem:[%s2424_s5 + $0x1] sm:$0x1]  ;;  %vm2431_vm2 = vmand %vm1153_vm0, %vm1154_vm1  ;;  %vm1177_vm3 = vcmask 1041408   ;;  %vm906_vm6 = vcmask 1039360  }
  0x3c   : > { %v747_v11 = vshrl.u32 %v746_v8, 7  ;;  %v895_v16 = vrot.slane %v2427_v12, 6  ;;  %v2436_v17 = vshll.u32 %v1752_v13, 16  ;;  %v1758_v60 = vld [vmem:[%s2424_s5 + $0x3] sm:$0x1]  ;;  %vm1201_vm7 = vcmask 1042432  }
  0x3d   : > { %v745_v14 = vunpack.c.0.s8 %v744_v10  ;;  %v1750_v18 = vld.sshfl [vmem:[%s689_s16] sm:$0x33 pattern:$0x75316420]  ;;  %v2494_v0 = vshll.u32 %v1758_v60, 16  ;;  %vm1225_vm9 = vcmask 1043456  }
  0x3e   : > { %904 = vrot.lane.b32.xlu1 %v895_v16, %s2256_s30  ;;  %v742_v20 = vcombine.high %v1750_v18, %v1750_v18  ;;  %v1334_v21 = vsel %vm2431_vm2, %v2427_v12, %v2436_v17  ;;  %v1753_v23 = vld.sshfl [vmem:[%s689_s16 + $0x4] sm:$0x33 pattern:$0x75316420]  ;;  %v918_v46 = vrot.slane %v2436_v17, 6  ;;  %vm998_vm12 = vcmask 1031168  }
  0x3f   : > { %v748_v19 = vsub.s32 %v745_v14, %v747_v11  ;;  %v1759_v26 = vld.sshfl [vmem:[%s689_s16 + $0xc] sm:$0x33 pattern:$0x75316420]  ;;  %v775_v27 = vcombine.high %v1753_v23, %v1753_v23  ;;  %v2500_v3 = vld [vmem:[%s2424_s5 + $0x2] sm:$0x1] }
  0x40   : > { %v833_v28 = vcombine.high %v1759_v26, %v1759_v26  ;;  %v1756_v33 = vld.sshfl [vmem:[%s689_s16 + $0x8] sm:$0x33 pattern:$0x75316420]  ;;  %vm1178_vm4 = vsmask.f32 1280 }
  0x41   : > { %v2444_v22 = vrot.slane %v1750_v18, %v748_v19  ;;  %v2446_v24 = vrot.slane %v742_v20, %v748_v19  ;;  %v782_v25 = vrot.slane %v1753_v23, %v748_v19  ;;  %v789_v32 = vrot.slane %v775_v27, %v748_v19  ;;  %vm2521_vm5 = vmand %vm1177_vm3, %vm1178_vm4  ;;  %s1766_s5 = sshll.u32 %s2241_s21, 5  ;;  %s1523_s21 = sshll.u32 %s722_s20, 4  ;;  %s1524_s21 = int_to_ptr.vmem [resolvable:$true] %s1523_s21 }
  0x42   : > { %v847_v35 = vrot.slane %v833_v28, %v748_v19  ;;  %v840_v44 = vrot.slane %v1759_v26, %v748_v19  ;;  %v2473_v47 = vrot.slane %v1756_v33, %v748_v19  ;;  %v804_v51 = vcombine.high %v1756_v33, %v1756_v33  ;;  %s1519_s16 = sadd.s32 %s1766_s5, %s1765_s6  ;;  %s1507_s10 = scalar_lea.sflag [#allocation5], %s687_s13 }
  0x43   : > { %v892_v29 = vrot.slane %v2446_v24, 6  ;;  %v2451_v30 = vcombine.high %v2446_v24, %v2446_v24  ;;  %v2453_v31 = vshll.u32 %v782_v25, 16  ;;  %v891_v34 = vrot.slane %v2444_v22, 6  ;;  %s2081_s11 = scalar_lea.vmem %s1524_s21, 256  ;;  %s2262_s14 = smov [#allocation4]  }
  0x44   : > { %v790_v36 = vcombine.high %v782_v25, %v782_v25  ;;  %v2460_v38 = vcombine.high %v2444_v22, %v2444_v22  ;;  %v2462_v39 = vshll.u32 %v789_v32, 16  ;;  %v791_v40 = vcombine.high %v789_v32, %v789_v32  ;;  %p2082_p4 = scmp.ne.s32.totalorder %s1524_s21, %s2081_s11  ;;  %s2085_s12 = sshll.u32 %s2262_s14, 4  ;;  %s2086_s12 = int_to_ptr.vmem [resolvable:$false] %s2085_s12 }
  0x45   : > { %898 = vrot.lane.b32.xlu0 %v892_v29, %s2256_s30  ;;  %v894_v37 = vrot.slane %v2451_v30, 6  ;;  %v2464_v41 = vshll.u32 %v847_v35, 16  ;;  %v911_v42 = vrot.slane %v2453_v31, 6  ;;  %v848_v54 = vcombine.high %v840_v44, %v840_v44  ;;  %s2087_s27 = scalar_lea.vmem %s2086_s12, 512  ;;  %p2088_p7 = scmp.lt.s32.totalorder %s1524_s21, %s2086_s12 }
  0x46   : > { %v2467_v43 = vshll.u32 %v790_v36, 16  ;;  %v2470_v45 = vshll.u32 %v791_v40, 16  ;;  %v912_v49 = vrot.slane %v2462_v39, 6  ;;  %v893_v52 = vrot.slane %v2460_v38, 6  ;;  %p2083_p5 = pnand %p2082_p4, %p2387_p10  ;;  %p2089_p8 = scmp.lt.s32.totalorder %s2087_s27, %s2081_s11 }
  0x47   : > { %902 = vrot.lane.b32.xlu1 %v894_v37, %s2256_s30  ;;  %v958_v48 = vrot.slane %v2464_v41, 5  ;;  %v849_v55 = vcombine.high %v847_v35, %v847_v35  ;;  %v2484_v58 = vcombine.high %v2473_v47, %v2473_v47  ;;  %v2486_v59 = vrot.slane %v804_v51, %v748_v19 }
  0x48   : > { %v913_v50 = vrot.slane %v2467_v43, 6  ;;  %v914_v53 = vrot.slane %v2470_v45, 6  ;;  %v2490_v62 = vshll.u32 %v848_v54, 16  ;;  %v2509_v7 = vshll.u32 %v840_v44, 16  ;;  %p2084_p6 = pneg %p2083_p5  ;;  %p2090_p9 = por %p2089_p8, %p2088_p7 }
  0x49   : > { %896 = vrot.lane.b32.xlu0 %v891_v34, %s2256_s30  ;;  %v2005_v56 = vpack.i.bf16 %v958_v48, %v911_v42  ;;  %v2492_v63 = vshll.u32 %v849_v55, 16  ;;  %v940_v1 = vrot.slane %v2484_v58, 5  ;;  %v939_v2 = vrot.slane %v2486_v59, 5 }
  0x4a   : > { %v2010_v57 = vpack.i.bf16 %v913_v50, %v912_v49  ;;  %v2015_v61 = vpack.i.bf16 %v918_v46, %v914_v53  ;;  %v2505_v4 = vcombine.high %v2486_v59, %v2486_v59  ;;  %v959_v5 = vrot.slane %v2490_v62, 5  ;;  %p2091_p11 = pnand %p2090_p9, %p2084_p6 }
  0x4b   : > { %2006 = vrot.lane.b32.xlu1 %v2005_v56, %s2256_s30  ;;  %v960_v6 = vrot.slane %v2492_v63, 5  ;;  %v942_v8 = vrot.slane %v2500_v3, 5  ;;  %v938_v9 = vrot.slane %v2473_v47, 5  ;;  %v964_v10 = vrot.slane %v2494_v0, 5 }
  0x4c   : > { %v1088_v11 = vrot.slane %v2453_v31, 2  ;;  %v1131_v13 = vrot.slane %v2464_v41, 1  ;;  %v941_v14 = vrot.slane %v2505_v4, 5  ;;  %v957_v18 = vrot.slane %v2509_v7, 5 }
  0x4d   : > { %900 = vrot.lane.b32.xlu0 %v893_v52, %s2256_s30  ;;  %v2020_v16 = vpack.i.bf16 %v960_v6, %v959_v5  ;;  %v1329_v20 = vrot.slane %v2500_v3, 7  ;;  %v1330_v25 = vrot.slane %v2494_v0, 7  ;;  %v869_v26 = vrot.slane %v2505_v4, 7 }
  0x4e   : > { %v2526_v23 = vpack.i.bf16 %v1131_v13, %v1088_v11  ;;  %v885_v27 = vrot.slane %v2492_v63, 7  ;;  %v1159_v29 = vsel %vm2431_vm2, %v2451_v30, %v2470_v45  ;;  %v866_v32 = vrot.slane %v2473_v47, 7 }
  0x4f   : > { %2011 = vrot.lane.b32.xlu1 %v2010_v57, %s2256_s30  ;;  %v1337_v28 = vsel %vm1153_vm0, %v1334_v21, %v1329_v20  ;;  %v873_v33 = vrot.slane %v2509_v7, 7  ;;  %v1175_v35 = vsel %vm1153_vm0, %v1159_v29, %v869_v26  ;;  %v1156_v21 = vsel %vm2431_vm2, %v2444_v22, %v2453_v31 }
  0x50   : > { %v2546_v34 = vsel %vm2521_vm5, %v1337_v28, %v1330_v25  ;;  %v867_v36 = vrot.slane %v2486_v59, 7  ;;  %v2557_v37 = vsel %vm2521_vm5, %v1175_v35, %v885_v27  ;;  %v1163_v40 = vsel %vm1153_vm0, %v1156_v21, %v866_v32 }
  0x51   : > { %2016 = vrot.lane.b32.xlu0 %v2015_v61, %s2256_s30  ;;  %v868_v42 = vrot.slane %v2484_v58, 7  ;;  %v877_v44 = vrot.slane %v2464_v41, 7  ;;  %v2564_v46 = vsel %vm2521_vm5, %v1163_v40, %v873_v33  ;;  %v881_v48 = vrot.slane %v2490_v62, 7 }
  0x52   : > { %v1157_v49 = vsel %vm2431_vm2, %v2446_v24, %v2462_v39  ;;  %v1158_v50 = vsel %vm2431_vm2, %v2460_v38, %v2467_v43  ;;  %v984_v53 = vrot.slane %v2446_v24, 4  ;;  %v2025_v15 = vpack.i.bf16 %v957_v18, %v964_v10 }
  0x53   : > { %947 = vrot.lane.b32.xlu1 %v940_v1, %s2256_s30  ;;  %v1167_v51 = vsel %vm1153_vm0, %v1157_v49, %v867_v36  ;;  %v1171_v52 = vsel %vm1153_vm0, %v1158_v50, %v868_v42  ;;  %v1007_v56 = vrot.slane %v2436_v17, 4  ;;  %v983_v57 = vrot.slane %v2444_v22, 4 }
  0x54   : > { %v2581_v54 = vsel %vm2521_vm5, %v1167_v51, %v877_v44  ;;  %v2585_v55 = vsel %vm2521_vm5, %v1171_v52, %v881_v48  ;;  %v1006_v60 = vrot.slane %v2470_v45, 4  ;;  %v1130_v61 = vrot.slane %v2509_v7, 1 }
  0x55   : > { %945 = vrot.lane.b32.xlu0 %v939_v2, %s2256_s30  ;;  %v1134_v1 = vrot.slane %v2494_v0, 1  ;;  %v987_v2 = vrot.slane %v2427_v12, 4  ;;  %v1004_v5 = vrot.slane %v2462_v39, 4  ;;  %v1005_v6 = vrot.slane %v2467_v43, 4 }
  0x56   : > { %v1003_v11 = vrot.slane %v2453_v31, 4  ;;  %v1046_v13 = vrot.slane %v2464_v41, 3  ;;  %v1027_v18 = vrot.slane %v2486_v59, 3  ;;  %v1029_v25 = vrot.slane %v2505_v4, 3 }
  0x57   : > { %951 = vrot.lane.b32.xlu1 %v942_v8, %s2256_s30  ;;  %v2602_v8 = vpack.i.bf16 %v1130_v61, %v1134_v1  ;;  %v2030_v10 = vpack.i.bf16 %v1005_v6, %v1004_v5  ;;  %v1028_v31 = vrot.slane %v2484_v58, 3  ;;  %v1026_v41 = vrot.slane %v2473_v47, 3 }
  0x58   : > { %v2040_v19 = vpack.i.bf16 %v1046_v13, %v1003_v11  ;;  %v1045_v26 = vrot.slane %v2509_v7, 3  ;;  %v1049_v27 = vrot.slane %v2494_v0, 3  ;;  %v1030_v28 = vrot.slane %v2500_v3, 3 }
  0x59   : > { %949 = vrot.lane.b32.xlu0 %v941_v14, %s2256_s30  ;;  %v1132_v14 = vrot.slane %v2490_v62, 1  ;;  %v1047_v29 = vrot.slane %v2490_v62, 3  ;;  %v1048_v32 = vrot.slane %v2492_v63, 3  ;;  %v1069_v7 = vrot.slane %v2446_v24, 2 }
  0x5a   : > { %v2050_v33 = vpack.i.bf16 %v1045_v26, %v1049_v27  ;;  %v1070_v0 = vrot.slane %v2460_v38, 2  ;;  %v1071_v62 = vrot.slane %v2451_v30, 2  ;;  %v1089_v21 = vrot.slane %v2462_v39, 2 }
  0x5b   : > { %2021 = vrot.lane.b32.xlu1 %v2020_v16, %s2256_s30  ;;  %v1133_v16 = vrot.slane %v2492_v63, 1  ;;  %v2045_v35 = vpack.i.bf16 %v1048_v32, %v1047_v29  ;;  %v1072_v63 = vrot.slane %v2427_v12, 2  ;;  %v1090_v36 = vrot.slane %v2467_v43, 2 }
  0x5c   : > { %v1068_v24 = vrot.slane %v2444_v22, 2  ;;  %v1091_v40 = vrot.slane %v2470_v45, 2  ;;  %v1112_v12 = vrot.slane %v2486_v59, 1  ;;  %v1113_v22 = vrot.slane %v2484_v58, 1 }
  0x5d   : > { %943 = vrot.lane.b32.xlu0 %v938_v9, %s2256_s30  ;;  %v2035_v9 = vpack.i.bf16 %v1007_v56, %v1006_v60  ;;  %v2613_v20 = vpack.i.bf16 %v1133_v16, %v1132_v14  ;;  %v2055_v42 = vpack.i.bf16 %v1090_v36, %v1089_v21  ;;  %vm1202_vm8 = vsmask.f32 2304 }
  0x5e   : > { %vm1226_vm10 = vsmask.f32 3328  ;;  %vm2669_vm11 = vmand %vm1201_vm7, %vm1202_vm8  ;;  %vm1249_vm13 = vcmask 1044480   ;;  %vm1250_vm14 = vsmask.f32 4352  ;;  %vm1273_vm1 = vcmask 1045504  }
  0x5f   : > { %990 = vrot.lane.b32.xlu1 %v984_v53, %s2257_s25  ;;  %vm2684_vm15 = vmand %vm1225_vm9, %vm1226_vm10  ;;  %vm1274_vm2 = vsmask.f32 5376  ;;  %vm1368_vm4 = vcmask 1014784   ;;  %vm1083_vm5 = vcmask 1022976   ;;  %vm1321_vm8 = vcmask 1047552  }
  0x60   : > { %vm2748_vm0 = vmand %vm1249_vm13, %vm1250_vm14 }
  0x61   : > { %2026 = vrot.lane.b32.xlu0 %v2025_v15, %s2256_s30  ;;  %s1767_s30 = sshll.u32 %s1519_s16, 6 }
  0x63   : > { %994 = vrot.lane.b32.xlu1 %v2451_v30, %s2257_s25 }
  0x65   : > { %992 = vrot.lane.b32.xlu0 %v2460_v38, %s2257_s25  ;;  %v1092_v38 = vrot.slane %v2436_v17, 2  ;;  %v1114_v17 = vrot.slane %v2505_v4, 1 }
  0x67   : > { %988 = vrot.lane.b32.xlu1 %v983_v57, %s2257_s25  ;;  %v2060_v30 = vpack.i.bf16 %v1092_v38, %v1091_v40 }
  0x69   : > { %996 = vrot.lane.b32.xlu0 %v987_v2, %s2257_s25 }
  0x6b   : > { %2036 = vrot.lane.b32.xlu1 %v2035_v9, %s2257_s25 }
  0x6d   : > { %2031 = vrot.lane.b32.xlu0 %v2030_v10, %s2257_s25 }
  0x6f   : > { %1033 = vrot.lane.b32.xlu1 %v1027_v18, %s2257_s25 }
  0x71   : > { %2041 = vrot.lane.b32.xlu0 %v2040_v19, %s2257_s25 }
  0x73   : > { %1037 = vrot.lane.b32.xlu1 %v1029_v25, %s2257_s25 }
  0x75   : > { %1035 = vrot.lane.b32.xlu0 %v1028_v31, %s2257_s25 }
  0x77   : > { %1031 = vrot.lane.b32.xlu1 %v1026_v41, %s2257_s25 }
  0x79   : > { %1039 = vrot.lane.b32.xlu0 %v1030_v28, %s2257_s25 }
  0x7b   : > { %2051 = vrot.lane.b32.xlu1 %v2050_v33, %s2257_s25 }
  0x7d   : > { %2046 = vrot.lane.b32.xlu0 %v2045_v35, %s2257_s25 }
  0x7f   : > { %1075 = vrot.lane.b32.xlu1 %v1069_v7, %s2258_s9 }
  0x81   : > { %1077 = vrot.lane.b32.xlu0 %v1070_v0, %s2258_s9 }
  0x83   : > { %1079 = vrot.lane.b32.xlu1 %v1071_v62, %s2258_s9 }
  0x85   : > { %1081 = vrot.lane.b32.xlu0 %v1072_v63, %s2258_s9 }
  0x87   : > { %1073 = vrot.lane.b32.xlu1 %v1068_v24, %s2258_s9 }
  0x89   : > { %2056 = vrot.lane.b32.xlu0 %v2055_v42, %s2258_s9 }
  0x8b   : > { %2061 = vrot.lane.b32.xlu1 %v2060_v30, %s2258_s9 }
  0x8d   : > { %2066 = vrot.lane.b32.xlu0 %v2526_v23, %s2258_s9 }
  0x8f   : > { %1118 = vrot.lane.b32.xlu1 %v1112_v12, %s2258_s9 }
  0x91   : > { %1120 = vrot.lane.b32.xlu0 %v1113_v22, %s2258_s9 }
  0x93   : > { %1122 = vrot.lane.b32.xlu1 %v1114_v17, %s2258_s9 }
  0xb0   : > { %v905_v39 = vpop.permute.xlu1 %904 }
  0xb1   : > { %v1342_v14 = vsel %vm1177_vm3, %v2546_v34, %v905_v39 }
  0xb7   : > { %v899_v43 = vpop.permute.xlu0 %898 }
  0xb9   : > { %v903_v45 = vpop.permute.xlu1 %902 }
  0xba   : > { %v910_v60 = vsel %vm906_vm6, %v903_v45, %v905_v39 }
  0xbb   : > { %v897_v44 = vpop.permute.xlu0 %896  ;;  %v1199_v31 = vsel %vm1177_vm3, %v2557_v37, %v910_v60 }
  0xbc   : > { %v907_v41 = vsel %vm906_vm6, %v897_v44, %v899_v43 }
  0xbd   : > { %v2655_v48 = vpop.permute.xlu1 %2006  ;;  %v1187_v62 = vsel %vm1177_vm3, %v2564_v46, %v907_v41  ;;  %v1115_v41 = vrot.slane %v2500_v3, 1 }
  0xbe   : > { %v2009_v2 = vunpack.i.h.bf16 %v2655_v48  ;;  %v2008_v34 = vunpack.i.l.bf16 %v2655_v48 }
  0xbf   : > { %v901_v59 = vpop.permute.xlu0 %900 }
  0xc0   : > { %v908_v61 = vsel %vm906_vm6, %v899_v43, %v901_v59  ;;  %v909_v27 = vsel %vm906_vm6, %v901_v59, %v903_v45 }
  0xc1   : > { %v2012_v49 = vpop.permute.xlu1 %2011  ;;  %v1191_v16 = vsel %vm1177_vm3, %v2581_v54, %v908_v61  ;;  %v1195_v24 = vsel %vm1177_vm3, %v2585_v55, %v909_v27  ;;  %vm2801_vm3 = vmand %vm1273_vm1, %vm1274_vm2 }
  0xc2   : > { %v2014_v53 = vunpack.i.h.bf16 %v2012_v49  ;;  %v2013_v15 = vunpack.i.l.bf16 %v2012_v49 }
  0xc3   : > { %v2017_v50 = vpop.permute.xlu0 %2016 }
  0xc4   : > { %v930_v5 = vsel %vm906_vm6, %v2013_v15, %v2014_v53  ;;  %v2019_v6 = vunpack.i.h.bf16 %v2017_v50  ;;  %v2018_v9 = vunpack.i.l.bf16 %v2017_v50  ;;  %v929_v40 = vsel %vm906_vm6, %v2008_v34, %v2013_v15 }
  0xc5   : > { %v2657_v23 = vpop.permute.xlu1 %947  ;;  %v1205_v54 = vsel %vm2669_vm11, %v1191_v16, %v930_v5  ;;  %v1204_v59 = vsel %vm2669_vm11, %v1187_v62, %v929_v40  ;;  %v1111_v15 = vrot.slane %v2473_v47, 1 }
  0xc6   : > { %v932_v28 = vsel %vm906_vm6, %v2018_v9, %v2019_v6  ;;  %v1344_v63 = vsel %vm2669_vm11, %v1342_v14, %v2019_v6  ;;  %v931_v46 = vsel %vm906_vm6, %v2014_v53, %v2018_v9 }
  0xc7   : > { %v946_v58 = vpop.permute.xlu0 %945  ;;  %v1207_v42 = vsel %vm2669_vm11, %v1199_v31, %v932_v28 }
  0xc8   : > { %v954_v13 = vsel %vm906_vm6, %v946_v58, %v2657_v23 }
  0xc9   : > { %v952_v51 = vpop.permute.xlu1 %951  ;;  %v1215_v29 = vsel %vm1201_vm7, %v1205_v54, %v954_v13 }
  0xca   : > { %v1347_v38 = vsel %vm1201_vm7, %v1344_v63, %v952_v51 }
  0xcb   : > { %v2659_v52 = vpop.permute.xlu0 %949 }
  0xcc   : > { %v956_v37 = vsel %vm906_vm6, %v2659_v52, %v952_v51  ;;  %v955_v48 = vsel %vm906_vm6, %v2657_v23, %v2659_v52 }
  0xcd   : > { %v2661_v4 = vpop.permute.xlu1 %2021  ;;  %v1223_v12 = vsel %vm1201_vm7, %v1207_v42, %v956_v37 }
  0xce   : > { %v2023_v57 = vunpack.i.l.bf16 %v2661_v4  ;;  %v2024_v32 = vunpack.i.h.bf16 %v2661_v4 }
  0xcf   : > { %v944_v56 = vpop.permute.xlu0 %943 }
  0xd0   : > { %v976_v19 = vsel %vm906_vm6, %v2009_v2, %v2023_v57  ;;  %v953_v22 = vsel %vm906_vm6, %v944_v56, %v946_v58  ;;  %v1206_v58 = vsel %vm2669_vm11, %v1195_v24, %v931_v46  ;;  %v977_v23 = vsel %vm906_vm6, %v2023_v57, %v2024_v32 }
  0xd1   : > { %v991_v1 = vpop.permute.xlu1 %990  ;;  %v1229_v0 = vsel %vm2684_vm15, %v1215_v29, %v976_v19  ;;  %v1211_v51 = vsel %vm1201_vm7, %v1204_v59, %v953_v22  ;;  %v1219_v47 = vsel %vm1201_vm7, %v1206_v58, %v955_v48  ;;  %vm1298_vm7 = vsmask.f32 6400 }
  0xd2   : > { %v1230_v9 = vsel %vm2684_vm15, %v1219_v47, %v977_v23 }
  0xd3   : > { %v2027_v11 = vpop.permute.xlu0 %2026 }
  0xd4   : > { %v2028_v18 = vunpack.i.l.bf16 %v2027_v11  ;;  %v2029_v35 = vunpack.i.h.bf16 %v2027_v11 }
  0xd5   : > { %v995_v26 = vpop.permute.xlu1 %994 }
  0xd6   : > { %v978_v36 = vsel %vm906_vm6, %v2024_v32, %v2028_v18  ;;  %v1349_v55 = vsel %vm2684_vm15, %v1347_v38, %v2028_v18  ;;  %v975_v44 = vsel %vm906_vm6, %v2029_v35, %v2009_v2  ;;  %vm1297_vm6 = vcmask 1046528  }
  0xd7   : > { %v993_v33 = vpop.permute.xlu0 %992  ;;  %v1231_v45 = vsel %vm2684_vm15, %v1223_v12, %v978_v36  ;;  %v1228_v2 = vsel %vm2684_vm15, %v1211_v51, %v975_v44  ;;  %v1374_v36 = vld [vmem:[%s2952_s3] sm:$0xff]  ;;  %vm2843_vm10 = vmand %vm1297_vm6, %vm1298_vm7 }
  0xd8   : > { %v1000_v7 = vsel %vm998_vm12, %v991_v1, %v993_v33  ;;  %v1001_v52 = vsel %vm998_vm12, %v993_v33, %v995_v26 }
  0xd9   : > { %v2708_v21 = vsel %vm1225_vm9, %v1229_v0, %v1000_v7  ;;  %v989_v30 = vpop.permute.xlu1 %988  ;;  %v1243_v16 = vsel %vm1225_vm9, %v1230_v9, %v1001_v52 }
  0xda   : > { %1360 = vrot.lane.b32.xlu1 %v2708_v21, %s2259_s29  ;;  %v999_v49 = vsel %vm998_vm12, %v989_v30, %v991_v1 }
  0xdb   : > { %v997_v17 = vpop.permute.xlu0 %996  ;;  %v1235_v57 = vsel %vm1225_vm9, %v1228_v2, %v999_v49 }
  0xdc   : > { %v1002_v39 = vsel %vm998_vm12, %v995_v26, %v997_v17  ;;  %v1352_v43 = vsel %vm1225_vm9, %v1349_v55, %v997_v17  ;;  %v2260_v26 = vmov 0  }
  0xdd   : > { %1366 = vrot.lane.b32.xlu0 %v1352_v43, %s2259_s29  ;;  %v1247_v50 = vsel %vm1225_vm9, %v1231_v45, %v1002_v39  ;;  %v2037_v53 = vpop.permute.xlu1 %2036  ;;  %1430 = vmatprep.mubr.bf16.mxu0 %v2260_v26 }
  0xde   : > { %1364 = vrot.lane.b32.xlu1 %v1247_v50, %s2259_s29  ;;  %v2039_v56 = vunpack.i.h.bf16 %v2037_v53  ;;  %v2038_v60 = vunpack.i.l.bf16 %v2037_v53  ;;  %1471 = vmatprep.mubr.bf16.mxu1 %v2260_v26 }
  0xdf   : > { %v2032_v1 = vpop.permute.xlu0 %2031  ;;  %2080 = vset.pattern.permute.xlu0 %v2260_v26 }
  0xe0   : > { %v2034_v5 = vunpack.i.h.bf16 %v2032_v1  ;;  %v2033_v4 = vunpack.i.l.bf16 %v2032_v1  ;;  %v1021_v6 = vsel %vm998_vm12, %v2038_v60, %v2039_v56 }
  0xe1   : > { %1358 = vrot.lane.b32.xlu0 %v1235_v57, %s2259_s29  ;;  %v1255_v10 = vsel %vm2748_vm0, %v1247_v50, %v1021_v6  ;;  %v1034_v13 = vpop.permute.xlu1 %1033 }
  0xe2   : > { %v1019_v11 = vsel %vm998_vm12, %v2033_v4, %v2034_v5  ;;  %1116 = vrot.lane.b32.xlu1 %v1111_v15, %s2258_s9  ;;  %v1020_v14 = vsel %vm998_vm12, %v2034_v5, %v2038_v60  ;;  %v2261_v60 = vmov 65535  }
  0xe3   : > { %v2042_v18 = vpop.permute.xlu0 %2041  ;;  %v1254_v19 = vsel %vm2748_vm0, %v1243_v16, %v1020_v14  ;;  %v1253_v25 = vsel %vm2748_vm0, %v2708_v21, %v1019_v11  ;;  %v1384_v61 = vsel %vm1225_vm9, 4294967295, %v2261_v60  ;;  %vm1322_vm9 = vsmask.f32 7424 }
  0xe4   : > { %v2043_v31 = vunpack.i.l.bf16 %v2042_v18  ;;  %v2044_v62 = vunpack.i.h.bf16 %v2042_v18  ;;  %v1385_v2 = vsel %vm1249_vm13, %v1384_v61, 0  ;;  %vm2865_vm11 = vmand %vm1321_vm8, %vm1322_vm9 }
  0xe5   : > { %1362 = vrot.lane.b32.xlu0 %v1243_v16, %s2259_s29  ;;  %v1038_v54 = vpop.permute.xlu1 %1037  ;;  %s2895_s29 = scalar_lea.hbm %s2953_s4, %s1767_s30 }
  0xe6   : > { %v1018_v34 = vsel %vm998_vm12, %v2043_v31, %v2033_v4  ;;  %2076 = vrot.lane.b32.xlu1 %v2602_v8, %s2258_s9 }
  0xe7   : > { %v1036_v27 = vpop.permute.xlu0 %1035  ;;  %v1252_v28 = vsel %vm2748_vm0, %v1235_v57, %v1018_v34 }
  0xe8   : > { %v1042_v29 = vsel %vm998_vm12, %v1034_v13, %v1036_v27  ;;  %v1043_v32 = vsel %vm998_vm12, %v1036_v27, %v1038_v54 }
  0xe9   : > { %v2781_v3 = vsel %vm1249_vm13, %v1253_v25, %v1042_v29  ;;  %v2784_v33 = vsel %vm1249_vm13, %v1254_v19, %v1043_v32  ;;  %1124 = vrot.lane.b32.xlu0 %v1115_v41, %s2258_s9  ;;  %v1032_v8 = vpop.permute.xlu1 %1031 }
  0xea   : > { %v1041_v37 = vsel %vm998_vm12, %v1032_v8, %v1034_v13 }
  0xeb   : > { %v1040_v35 = vpop.permute.xlu0 %1039  ;;  %v2789_v7 = vsel %vm1249_vm13, %v1252_v28, %v1041_v37 }
  0xec   : > { %v1044_v0 = vsel %vm998_vm12, %v1038_v54, %v1040_v35 }
  0xed   : > { %v2793_v63 = vsel %vm1249_vm13, %v1255_v10, %v1044_v0  ;;  %2071 = vrot.lane.b32.xlu0 %v2613_v20, %s2258_s9  ;;  %v2052_v21 = vpop.permute.xlu1 %2051 }
  0xee   : > { %v2054_v24 = vunpack.i.h.bf16 %v2052_v21  ;;  %v2053_v40 = vunpack.i.l.bf16 %v2052_v21 }
  0xef   : > { %v2047_v38 = vpop.permute.xlu0 %2046 }
  0xf0   : > { %v2049_v30 = vunpack.i.h.bf16 %v2047_v38  ;;  %v2048_v46 = vunpack.i.l.bf16 %v2047_v38  ;;  %v2806_v12 = vsel %vm998_vm12, %v2054_v24, %v2044_v62 }
  0xf1   : > { %1377 = vperm.xlu0 %2080, %v1374_v36   ;;  %v1276_v55 = vsel %vm2801_vm3, %v2789_v7, %v2806_v12  ;;  %v1076_v44 = vpop.permute.xlu1 %1075 }
  0xf2   : > { %v1061_v20 = vsel %vm998_vm12, %v2044_v62, %v2048_v46  ;;  %v1062_v22 = vsel %vm998_vm12, %v2048_v46, %v2049_v30  ;;  %v1063_v17 = vsel %vm998_vm12, %v2049_v30, %v2053_v40  ;;  %vm1380_vm12 = vcmask 203776  }
  0xf3   : > { %v1277_v39 = vsel %vm2801_vm3, %v2781_v3, %v1061_v20  ;;  %v1278_v43 = vsel %vm2801_vm3, %v2784_v33, %v1062_v22  ;;  %v1279_v45 = vsel %vm2801_vm3, %v2793_v63, %v1063_v17  ;;  %v1078_v59 = vpop.permute.xlu0 %1077 }
  0xf4   : > { %v1085_v25 = vsel %vm1083_vm5, %v1076_v44, %v1078_v59 }
  0xf5   : > { %v1080_v48 = vpop.permute.xlu1 %1079  ;;  %v1287_v3 = vsel %vm1273_vm1, %v1277_v39, %v1085_v25 }
  0xf6   : > { %v1086_v31 = vsel %vm1083_vm5, %v1078_v59, %v1080_v48 }
  0xf7   : > { %v1082_v50 = vpop.permute.xlu0 %1081  ;;  %v1291_v33 = vsel %vm1273_vm1, %v1278_v43, %v1086_v31 }
  0xf8   : > { %v1087_v54 = vsel %vm1083_vm5, %v1080_v48, %v1082_v50 }
  0xf9   : > { %v1074_v49 = vpop.permute.xlu1 %1073  ;;  %v1295_v7 = vsel %vm1273_vm1, %v1279_v45, %v1087_v54 }
  0xfa   : > { %v1084_v26 = vsel %vm1083_vm5, %v1074_v49, %v1076_v44 }
  0xfb   : > { %v2057_v51 = vpop.permute.xlu0 %2056  ;;  %v1283_v0 = vsel %vm1273_vm1, %v1276_v55, %v1084_v26 }
  0xfc   : > { %v2059_v9 = vunpack.i.h.bf16 %v2057_v51  ;;  %v2058_v10 = vunpack.i.l.bf16 %v2057_v51 }
  0xfd   : > { %v2062_v58 = vpop.permute.xlu1 %2061 }
  0xfe   : > { %v2064_v14 = vunpack.i.h.bf16 %v2062_v58  ;;  %v2063_v16 = vunpack.i.l.bf16 %v2062_v58  ;;  %v1104_v8 = vsel %vm1083_vm5, %v2058_v10, %v2059_v9 }
  0xff   : > { %v2824_v15 = vpop.permute.xlu0 %2066  ;;  %v1301_v46 = vsel %vm2843_vm10, %v1287_v3, %v1104_v8 }
 0x100   : > { %v2068_v27 = vunpack.i.l.bf16 %v2824_v15  ;;  %v1106_v37 = vsel %vm1083_vm5, %v2063_v16, %v2064_v14  ;;  %v1105_v62 = vsel %vm1083_vm5, %v2059_v9, %v2063_v16  ;;  %v2069_v38 = vunpack.i.h.bf16 %v2824_v15 }
 0x101   : > { %v1119_v53 = vpop.permute.xlu1 %1118  ;;  %v1303_v12 = vsel %vm2843_vm10, %v1295_v7, %v1106_v37  ;;  %v1302_v55 = vsel %vm2843_vm10, %v1291_v33, %v1105_v62 }
 0x102   : > { %v1103_v21 = vsel %vm1083_vm5, %v2068_v27, %v2058_v10 }
 0x103   : > { %v1121_v52 = vpop.permute.xlu0 %1120  ;;  %v1300_v44 = vsel %vm2843_vm10, %v1283_v0, %v1103_v21 }
 0x104   : > { %v1127_v36 = vsel %vm1083_vm5, %v1119_v53, %v1121_v52 }
 0x105   : > { %v1123_v23 = vpop.permute.xlu1 %1122  ;;  %v1311_v39 = vsel %vm1297_vm6, %v1301_v46, %v1127_v36 }
 0x106   : > { %v1128_v24 = vsel %vm1083_vm5, %v1121_v52, %v1123_v23 }
 0x107   : > { %v1315_v48 = vsel %vm1297_vm6, %v1302_v55, %v1128_v24 }
 0x14c   : > { %v1361_v56 = vpop.permute.xlu1 %1360 }
 0x14f   : > { %v1367_v1 = vpop.permute.xlu0 %1366 }
 0x150   : > { %v1365_v47 = vpop.permute.xlu1 %1364 }
 0x151   : > { %v1372_v5 = vsel %vm1368_vm4, %v1365_v47, %v1367_v1 }
 0x152   : > { %v1396_v4 = vand.u32 %v1385_v2, %v1372_v5 }
 0x153   : > { %v1359_v57 = vpop.permute.xlu0 %1358 }
 0x154   : > { %1451 = vmatprep.subr.bf16.mxu1 %v1396_v4  ;;  %v1117_v6 = vpop.permute.xlu1 %1116  ;;  %v1369_v11 = vsel %vm1368_vm4, %v1359_v57, %v1361_v56 }
 0x155   : > { %v1387_v29 = vand.u32 %v1385_v2, %v1369_v11  ;;  %v1126_v20 = vsel %vm1083_vm5, %v1117_v6, %v1119_v53 }
 0x156   : > { %v1307_v15 = vsel %vm1297_vm6, %v1300_v44, %v1126_v20 }
 0x157   : > { %v1363_v13 = vpop.permute.xlu0 %1362 }
 0x158   : > { %v1371_v18 = vsel %vm1368_vm4, %v1363_v13, %v1365_v47  ;;  %v1370_v19 = vsel %vm1368_vm4, %v1361_v56, %v1363_v13  ;;  %v2077_v28 = vpop.permute.xlu1 %2076  ;;  %v1373_v56 = vld [vmem:[%s2951_s2] sm:$0xf] }
 0x159   : > { %v1390_v41 = vand.u32 %v1385_v2, %v1370_v19  ;;  %v1393_v34 = vand.u32 %v1385_v2, %v1371_v18  ;;  %v2079_v63 = vunpack.i.h.bf16 %v2077_v28  ;;  %v2078_v40 = vunpack.i.l.bf16 %v2077_v28 }
 0x15b   : > { %1410 = vmatprep.subr.bf16.mxu0 %v1390_v41  ;;  %1452 = vmatpush1.bf16.msra.mxu1 %v1393_v34  ;;  %v1125_v32 = vpop.permute.xlu0 %1124  ;;  %v1145_v45 = vsel %vm1083_vm5, %v2079_v63, %v2069_v38 }
 0x15c   : > { %1411 = vmatpush1.bf16.msra.mxu0 %v1387_v29  ;;  %v1129_v42 = vsel %vm1083_vm5, %v1123_v23, %v1125_v32  ;;  %v1324_v52 = vsel %vm2865_vm11, %v1307_v15, %v1145_v45 }
 0x15d   : > { %v1319_v50 = vsel %vm1297_vm6, %v1303_v12, %v1129_v42 }
 0x15f   : > { %v2072_v30 = vpop.permute.xlu0 %2071 }
 0x160   : > { %v2074_v22 = vunpack.i.h.bf16 %v2072_v30  ;;  %v2073_v17 = vunpack.i.l.bf16 %v2072_v30 }
 0x162   : > { %v1146_v59 = vsel %vm1083_vm5, %v2069_v38, %v2073_v17  ;;  %v1148_v49 = vsel %vm1083_vm5, %v2074_v22, %v2078_v40  ;;  %v1147_v58 = vsel %vm1083_vm5, %v2073_v17, %v2074_v22 }
 0x163   : > { %v1325_v51 = vsel %vm2865_vm11, %v1311_v39, %v1146_v59  ;;  %v1327_v53 = vsel %vm2865_vm11, %v1319_v50, %v1148_v49  ;;  %v1326_v23 = vsel %vm2865_vm11, %v1315_v48, %v1147_v58 }
 0x164   : > { %1412 = vmatprep.subr.bf16.mxu0 %v1325_v51  ;;  %1453 = vmatprep.subr.bf16.mxu1 %v1327_v53 }
 0x165   : > { %1413 = vmatpush1.bf16.msra.mxu0 %v1324_v52  ;;  %1454 = vmatpush1.bf16.msra.mxu1 %v1326_v23 }
 0x168   : > { %1760 = vmatmul.mubr.msk.bf16.vlgmr.msra.gmra.mxu0 %vm1380_vm12, %v1373_v56  ;;  %1761 = vmatmul.mubr.msk.bf16.vlgmr.msra.gmra.mxu1 %vm1380_vm12, %v1373_v56 }
 0x16c   : > { %v1378_v60 = vpop.permute.xlu0 %1377 }
 0x228   : > { %v1432_v61 = vpop.f32.mrf.mxu0  ;;  %v1473_v1 = vpop.f32.mrf.mxu1 }
 0x229   : > { %v1433_v2 = vadd.f32 %v1432_v61, %v1378_v60  ;;  %v1474_v47 = vadd.f32 %v1473_v1, %v1378_v60 }
 0x22a   : > { %v1434_v5 = vpop.f32.mrf.mxu0  ;;  %v1475_v4 = vpop.f32.mrf.mxu1 }
 0x22b   : > { %v1480_v57 = vmul.f32 0.2, %v1433_v2  ;;  %v1482_v6 = vmul.f32 0.2, %v1474_v47  ;;  %v1435_v9 = vadd.f32 %v1434_v5, %v1378_v60  ;;  %v1476_v10 = vadd.f32 %v1475_v4, %v1378_v60 }
 0x22c   : > { %v1436_v11 = vpop.f32.mrf.mxu0  ;;  %v1477_v13 = vpop.f32.mrf.mxu1 }
 0x22d   : > { %v1481_v14 = vmul.f32 0.2, %v1435_v9  ;;  %v1483_v16 = vmul.f32 0.2, %v1476_v10  ;;  %v1484_v25 = vmax.f32 %v1433_v2, %v1480_v57  ;;  %v1486_v31 = vmax.f32 %v1474_v47, %v1482_v6 }
 0x22e   : > { %v1437_v18 = vpop.f32.mrf.mxu0  ;;  %v1478_v19 = vpop.f32.mrf.mxu1 }
 0x22f   : > { %v1485_v41 = vmax.f32 %v1435_v9, %v1481_v14  ;;  %v1487_v34 = vmax.f32 %v1476_v10, %v1483_v16 }
 0x231   : > { %v1778_v54 = vpack.c.bf16 %v1485_v41, %v1484_v25  ;;  %v1779_v26 = vpack.c.bf16 %v1487_v34, %v1486_v31 }
 0x233   : > { %1504 = vst [vmem:[%s722_s20] sm:$0xff] %v1778_v54  ;;  %1505 = vst [vmem:[%s722_s20 + $0x8] sm:$0xff] %v1779_v26 }
 0x234   : > { %2094 = shalt.err (!%p2091_p11)
}
 0x235   : > { %s2095_s6 = scalar_lea.hbm %s2895_s29, 256  ;;  %s2099_s16 = scalar_lea.hbm %s2953_s4, 4096 }
 0x236   : > { %p2096_p12 = scmp.ne.s32.totalorder %s2895_s29, %s2095_s6  ;;  %p2100_p2 = scmp.lt.s32.totalorder %s2895_s29, %s2953_s4 }
 0x237   : > { %p2101_p3 = scmp.lt.s32.totalorder %s2099_s16, %s2095_s6 }
 0x238   : > { %p2097_p0 = pnand %p2096_p12, %p2387_p10 }
 0x239   : > { %p2102_p4 = por %p2101_p3, %p2100_p2 }
 0x23a   : > { %p2098_p1 = pneg %p2097_p0 }
 0x23c   : > { %p2103_p5 = pnand %p2102_p4, %p2098_p1 }
 0x23e   : > { %2106 = shalt.err (!%p2103_p5)
}
 0x23f   : > { %1781 = dma.vmem_to_hbm [thread:$0]  (%p2387_p10), %s1524_s21, 256, %s2895_s29, %s1507_s10  }
 0x240 PF: > { %p1787_p6 = scmp.ge.s32.totalorder %s2253_s24, 2  ;;  %s1535_s25 = sand.u32 1, %s2217_s15  }
 0x241   : > { %s1536_s9 = scalar_lea.sflag [#allocation5], %s1535_s25 }
 0x242   : > { %p1784_p7 = pnand %p1787_p6, %p2395_p13 }
 0x244   : > { %p1785_p8 = pneg %p1784_p7 }
 0x246   : > { %2212 = dma.done.wait (%p1785_p8), %s1536_s9, 256  }
 0x247   : > { %2214 = vsyncadd (%p1785_p8), %s1536_s9, 4294967040  ;;  %s17_s24 = sadd.s32 1, %s2253_s24   ;;  %s2979_s20 = sld [smem:[#allocation7_spill]] }
 0x248   : > { %p14_p9 = scmp.ge.s32.totalorder %s17_s24, 18   ;;  %s2980_s8 = sld [smem:[#allocation8_spill]] }
 0x249   : > { %s2981_s15 = smov %s2229_s18  ;;  %s2982_s16 = smov %s2225_s17 }
 0x24a   : > { %s2983_s17 = smov %s2376_s22  ;;  %s2984_s18 = smov %s2233_s19 }
 0x24b   : > { %s2985_s19 = smov %s2373_s26  ;;  %s2986_s21 = smov %s2249_s23 }
 0x24c   : > { %s2988_s23 = smov %s2994_s28  ;;  %16 = sbr.rel (!%p14_p9) target bundleno = 6 (0x6), region = 252 }
 0x24e   : > { %s2987_s22 = smov %s2980_s8 }
 0x251   :  { %1541 = vsyncpa [#allocation5], 1 }
 0x252   :  { %1543 = vsyncpa [#allocation5 + $0x1], 1 }

</bundles_post_ra>
